<compile_context>
chip_gen: v6e
topology: v6e:2x2x1
jax: 0.10.0
libtpu: 0.0.40
codegen_flags: <defaults>
</compile_context>

<pallas_src>
from typing import Tuple

import jax
import jax.numpy as jnp
from jax.experimental import pallas as pl
from jax.experimental.pallas import tpu as pltpu


# ----------------------------- Pallas kernel ---------------------------------
def _identity_dma_kernel(*refs):
    """Copy N HBM inputs to N HBM outputs with direct HBM->HBM async DMAs.

    refs = (in_0, ..., in_{n-1}, out_0, ..., out_{n-1}, sem)
    All DMAs are issued before any wait so they overlap on the DMA engines.
    """
    n = (len(refs) - 1) // 2
    sem = refs[-1]
    copies = [
        pltpu.make_async_copy(refs[i], refs[n + i], sem.at[i]) for i in range(n)
    ]
    for cp in copies:   # static Python loop, unrolled at trace time
        cp.start()
    for cp in copies:
        cp.wait()


# ------------------------------ wrapper ---------------------------------------
def _identity_fused_dma(xs):
    """One grid-less pallas_call copying every operand HBM->HBM."""
    n = len(xs)
    out_shape = tuple(jax.ShapeDtypeStruct(x.shape, x.dtype) for x in xs)
    return pl.pallas_call(
        _identity_dma_kernel,
        out_shape=out_shape,
        # No grid, no BlockSpec tiling: inputs stay in HBM, outputs are
        # allocated in HBM, the kernel moves the bytes with raw DMAs.
        in_specs=[pl.BlockSpec(memory_space=pl.ANY) for _ in xs],
        out_specs=tuple(pl.BlockSpec(memory_space=pl.ANY) for _ in xs),
        scratch_shapes=[pltpu.SemaphoreType.DMA((n,))],
    )(*xs)


def identity_forward(*inputs) -> Tuple[jnp.ndarray, ...]:
    """Pallas equivalent of Identity.forward(*input) -> tuple(input)."""
    if not inputs:
        return ()

    outs = [None] * len(inputs)
    # Degenerate operands (zero elements) are passed through untouched; a
    # zero-byte DMA buys nothing. True Identity could do this for ALL inputs.
    copy_idx = [i for i, x in enumerate(inputs) if x.size > 0]
    for i in range(len(inputs)):
        if i not in copy_idx:
            outs[i] = inputs[i]

    if copy_idx:
        copied = _identity_fused_dma([inputs[i] for i in copy_idx])
        for j, i in enumerate(copy_idx):
            outs[i] = copied[j]

    return tuple(outs)


class Identity:
    """Mirrors the PyTorch Identity module's interface."""

    def __init__(self, *args, **kwargs):
        pass

    def forward(self, *input):
        return identity_forward(*input)

    __call__ = forward


# --------------------------------- demo ---------------------------------------
if __name__ == "__main__":
    key = jax.random.PRNGKey(0)
    k1, k2, k3, k4 = jax.random.split(key, 4)

    # Mix of shapes/dtypes; the HBM->HBM DMA path is layout-agnostic, so a
    # ragged (non-multiple-of-128) last dim is handled without masked stores.
    x1 = jax.random.normal(k1, (8, 256), dtype=jnp.float32)
    x2 = jax.random.normal(k2, (16, 128), dtype=jnp.float32).astype(jnp.bfloat16)
    x3 = jax.random.normal(k3, (3, 5, 33), dtype=jnp.float32)
    # Large (1 MiB) operand: single direct HBM->HBM DMA, no VMEM staging.
    x4 = jax.random.normal(k4, (1024, 256), dtype=jnp.float32)

    module = Identity()
    outs = module(x1, x2, x3, x4)
    outs = jax.block_until_ready(outs)

    refs = (x1, x2, x3, x4)
    assert isinstance(outs, tuple) and len(outs) == len(refs)
    for y, x in zip(outs, refs):
        assert y.shape == x.shape and y.dtype == x.dtype
        assert jnp.array_equal(y, x)

    print("KERNEL_OK")
</pallas_src>

<mosaic_0001>
module attributes {stable_mosaic.version = 11 : i64} {
  func.func @_identity_dma_kernel(%arg0: memref<8x256xf32, #tpu.memory_space<any>>, %arg1: memref<16x128xbf16, #tpu.memory_space<any>>, %arg2: memref<3x5x33xf32, #tpu.memory_space<any>>, %arg3: memref<1024x256xf32, #tpu.memory_space<any>>, %arg4: memref<8x256xf32, #tpu.memory_space<any>>, %arg5: memref<16x128xbf16, #tpu.memory_space<any>>, %arg6: memref<3x5x33xf32, #tpu.memory_space<any>>, %arg7: memref<1024x256xf32, #tpu.memory_space<any>>, %arg8: memref<4x!tpu.dma_semaphore, #tpu.memory_space<semaphore_mem>>) attributes {dimension_semantics = [], scalar_prefetch = 0 : i64, scratch_operands = 1 : i64, tpu.core_type = #tpu.core_type<tc>} {
    %c0_i32 = arith.constant 0 : i32
    %0 = tpu.memref_slice %arg8[%c0_i32] : memref<4x!tpu.dma_semaphore, #tpu.memory_space<semaphore_mem>> -> memref<1x!tpu.dma_semaphore, #tpu.memory_space<semaphore_mem>>
    %1 = tpu.memref_squeeze %0 : memref<1x!tpu.dma_semaphore, #tpu.memory_space<semaphore_mem>> -> memref<!tpu.dma_semaphore, #tpu.memory_space<semaphore_mem>>
    tpu.enqueue_dma source(%arg0 : memref<8x256xf32, #tpu.memory_space<any>>) target(%arg4 : memref<8x256xf32, #tpu.memory_space<any>>) target_semaphore(%1 : memref<!tpu.dma_semaphore, #tpu.memory_space<semaphore_mem>>)
    %c1_i32 = arith.constant 1 : i32
    %2 = tpu.memref_slice %arg8[%c1_i32] : memref<4x!tpu.dma_semaphore, #tpu.memory_space<semaphore_mem>> -> memref<1x!tpu.dma_semaphore, #tpu.memory_space<semaphore_mem>>
    %3 = tpu.memref_squeeze %2 : memref<1x!tpu.dma_semaphore, #tpu.memory_space<semaphore_mem>> -> memref<!tpu.dma_semaphore, #tpu.memory_space<semaphore_mem>>
    tpu.enqueue_dma source(%arg1 : memref<16x128xbf16, #tpu.memory_space<any>>) target(%arg5 : memref<16x128xbf16, #tpu.memory_space<any>>) target_semaphore(%3 : memref<!tpu.dma_semaphore, #tpu.memory_space<semaphore_mem>>)
    %c2_i32 = arith.constant 2 : i32
    %4 = tpu.memref_slice %arg8[%c2_i32] : memref<4x!tpu.dma_semaphore, #tpu.memory_space<semaphore_mem>> -> memref<1x!tpu.dma_semaphore, #tpu.memory_space<semaphore_mem>>
    %5 = tpu.memref_squeeze %4 : memref<1x!tpu.dma_semaphore, #tpu.memory_space<semaphore_mem>> -> memref<!tpu.dma_semaphore, #tpu.memory_space<semaphore_mem>>
    tpu.enqueue_dma source(%arg2 : memref<3x5x33xf32, #tpu.memory_space<any>>) target(%arg6 : memref<3x5x33xf32, #tpu.memory_space<any>>) target_semaphore(%5 : memref<!tpu.dma_semaphore, #tpu.memory_space<semaphore_mem>>)
    %c3_i32 = arith.constant 3 : i32
    %6 = tpu.memref_slice %arg8[%c3_i32] : memref<4x!tpu.dma_semaphore, #tpu.memory_space<semaphore_mem>> -> memref<1x!tpu.dma_semaphore, #tpu.memory_space<semaphore_mem>>
    %7 = tpu.memref_squeeze %6 : memref<1x!tpu.dma_semaphore, #tpu.memory_space<semaphore_mem>> -> memref<!tpu.dma_semaphore, #tpu.memory_space<semaphore_mem>>
    tpu.enqueue_dma source(%arg3 : memref<1024x256xf32, #tpu.memory_space<any>>) target(%arg7 : memref<1024x256xf32, #tpu.memory_space<any>>) target_semaphore(%7 : memref<!tpu.dma_semaphore, #tpu.memory_space<semaphore_mem>>)
    %c0_i32_0 = arith.constant 0 : i32
    %8 = tpu.memref_slice %arg8[%c0_i32_0] : memref<4x!tpu.dma_semaphore, #tpu.memory_space<semaphore_mem>> -> memref<1x!tpu.dma_semaphore, #tpu.memory_space<semaphore_mem>>
    %9 = tpu.memref_squeeze %8 : memref<1x!tpu.dma_semaphore, #tpu.memory_space<semaphore_mem>> -> memref<!tpu.dma_semaphore, #tpu.memory_space<semaphore_mem>>
    tpu.wait_dma2 semaphore(%9 : memref<!tpu.dma_semaphore, #tpu.memory_space<semaphore_mem>>) src(%arg0 : memref<8x256xf32, #tpu.memory_space<any>>) dst(%arg4 : memref<8x256xf32, #tpu.memory_space<any>>)
    %c1_i32_1 = arith.constant 1 : i32
    %10 = tpu.memref_slice %arg8[%c1_i32_1] : memref<4x!tpu.dma_semaphore, #tpu.memory_space<semaphore_mem>> -> memref<1x!tpu.dma_semaphore, #tpu.memory_space<semaphore_mem>>
    %11 = tpu.memref_squeeze %10 : memref<1x!tpu.dma_semaphore, #tpu.memory_space<semaphore_mem>> -> memref<!tpu.dma_semaphore, #tpu.memory_space<semaphore_mem>>
    tpu.wait_dma2 semaphore(%11 : memref<!tpu.dma_semaphore, #tpu.memory_space<semaphore_mem>>) src(%arg1 : memref<16x128xbf16, #tpu.memory_space<any>>) dst(%arg5 : memref<16x128xbf16, #tpu.memory_space<any>>)
    %c2_i32_2 = arith.constant 2 : i32
    %12 = tpu.memref_slice %arg8[%c2_i32_2] : memref<4x!tpu.dma_semaphore, #tpu.memory_space<semaphore_mem>> -> memref<1x!tpu.dma_semaphore, #tpu.memory_space<semaphore_mem>>
    %13 = tpu.memref_squeeze %12 : memref<1x!tpu.dma_semaphore, #tpu.memory_space<semaphore_mem>> -> memref<!tpu.dma_semaphore, #tpu.memory_space<semaphore_mem>>
    tpu.wait_dma2 semaphore(%13 : memref<!tpu.dma_semaphore, #tpu.memory_space<semaphore_mem>>) src(%arg2 : memref<3x5x33xf32, #tpu.memory_space<any>>) dst(%arg6 : memref<3x5x33xf32, #tpu.memory_space<any>>)
    %c3_i32_3 = arith.constant 3 : i32
    %14 = tpu.memref_slice %arg8[%c3_i32_3] : memref<4x!tpu.dma_semaphore, #tpu.memory_space<semaphore_mem>> -> memref<1x!tpu.dma_semaphore, #tpu.memory_space<semaphore_mem>>
    %15 = tpu.memref_squeeze %14 : memref<1x!tpu.dma_semaphore, #tpu.memory_space<semaphore_mem>> -> memref<!tpu.dma_semaphore, #tpu.memory_space<semaphore_mem>>
    tpu.wait_dma2 semaphore(%15 : memref<!tpu.dma_semaphore, #tpu.memory_space<semaphore_mem>>) src(%arg3 : memref<1024x256xf32, #tpu.memory_space<any>>) dst(%arg7 : memref<1024x256xf32, #tpu.memory_space<any>>)
    return
  }
}

</mosaic_0001>

<bundles_post_ra>
// kernel: tpu_custom_call.1
= control target key start
LH: loop header
LB: loop body
LE: loop exit
PB: predicated region body
PF: predicated region fallthrough
CT: control target
= control target key end

     0   :  { %s298_s0 = inlined_call_operand.vmem [shape: f32[8,256], index: 0, kind: input, shape index: {}]   ;;  %s299_s3 = inlined_call_operand.hbm [shape: f32[1024,256], index: 3, kind: input, shape index: {}]   ;;  %s300_s4 = inlined_call_operand.hbm [shape: f32[8,256], index: 4, kind: output, shape index: {0}]   ;;  %s301_s7 = inlined_call_operand.hbm [shape: f32[1024,256], index: 7, kind: output, shape index: {3}]   ;;  %s302_s1 = inlined_call_operand.vmem [shape: bf16[16,128], index: 1, kind: input, shape index: {}]   ;;  %s303_s2 = inlined_call_operand.vmem [shape: f32[3,5,33], index: 2, kind: input, shape index: {}]   ;;  %s304_s6 = inlined_call_operand.vmem [shape: f32[3,5,33], index: 6, kind: output, shape index: {2}]   ;;  %s305_s5 = inlined_call_operand.hbm [shape: bf16[16,128], index: 5, kind: output, shape index: {1}]  }
   0x1   :  { %s20_s26 = sshll.u32 %s298_s0, 4  ;;  %s32_s29 = sshll.u32 %s302_s1, 4  ;;  %v55_v0 = vld [vmem:[%s303_s2] sm:$0x1f]  ;;  %v57_v1 = vld [vmem:[%s303_s2 + $0x8] sm:$0x1f]  ;;  %s21_s26 = int_to_ptr.vmem [resolvable:$true] %s20_s26  ;;  %s33_s29 = int_to_ptr.vmem [resolvable:$true] %s32_s29 }
   0x2   :  { %56 = vst [vmem:[%s304_s6] sm:$0x1f] %v55_v0  ;;  %58 = vst [vmem:[%s304_s6 + $0x8] sm:$0x1f] %v57_v1  ;;  %v59_v2 = vld [vmem:[%s303_s2 + $0x10] sm:$0x1f]  ;;  %s171_s15 = scalar_lea.vmem %s21_s26, 256  ;;  %p176_p1 = scmp.lt.s32.totalorder %s21_s26, %s21_s26 }
   0x3   :  { %p172_p0 = scmp.ne.s32.totalorder %s21_s26, %s171_s15  ;;  %p177_p2 = scmp.lt.s32.totalorder %s171_s15, %s171_s15 }
   0x5   :  { %p178_p3 = por %p177_p2, %p176_p1 }
   0x7   :  { %p179_p4 = pnand %p178_p3, %p172_p0 }
   0x9   :  { %182 = shalt.err (!%p179_p4)  }
   0xa   :  { %23 = dma.vmem_to_hbm [thread:$0]  %s21_s26, 256, %s300_s4, [#allocation2]  ;;  %60 = vst [vmem:[%s304_s6 + $0x10] sm:$0x1f] %v59_v2 }
   0xb   :  { %s191_s20 = scalar_lea.vmem %s33_s29, 128  ;;  %p196_p6 = scmp.lt.s32.totalorder %s33_s29, %s33_s29 }
   0xc   :  { %p192_p5 = scmp.ne.s32.totalorder %s33_s29, %s191_s20  ;;  %p197_p7 = scmp.lt.s32.totalorder %s191_s20, %s191_s20 }
   0xe   :  { %p198_p8 = por %p197_p7, %p196_p6 }
  0x10   :  { %p199_p9 = pnand %p198_p8, %p192_p5 }
  0x12   :  { %202 = shalt.err (!%p199_p9)  }
  0x13   :  { %35 = dma.vmem_to_hbm [thread:$0]  %s33_s29, 128, %s305_s5, [#allocation2 + $0x1] }
  0x14   :  { %98 = vsyncadd [#allocation2 + $0x2], 240  ;;  %s219_s22 = smov [#allocation2 + $0x3]   ;;  %s220_s23 = smov 131072  }
  0x15   :  { %s221_s24 = smov 0  }
  0x16   :  { %106 = dma.general %s299_s3, 32768, %s301_s7, %s219_s22, %s220_s23, [#allocation11], %s221_s24, 0  }
  0x17   :  { %211 = dma.done.wait [#allocation2], 256 }
  0x18   :  { %212 = vsyncadd [#allocation2], 4294967040 }
  0x19   :  { %213 = dma.done.wait [#allocation2 + $0x1], 128 }
  0x1a   :  { %214 = vsyncadd [#allocation2 + $0x1], 4294967168 }
  0x1b   :  { %215 = dma.done.wait [#allocation2 + $0x2], 240 }
  0x1c   :  { %216 = vsyncadd [#allocation2 + $0x2], 4294967056 }
  0x1d   :  { %217 = dma.done.wait [#allocation2 + $0x3], 32768 }
  0x1e   :  { %218 = vsyncadd [#allocation2 + $0x3], 4294934528 }
  0x1f   :  { %123 = vsyncmov [#allocation2] }
  0x22   :  { %s124_s5 = vpop.sfrf %123 }
  0x23   :  { %p164_p10 = scmp.ne.s32.totalorder %s124_s5, 0 }
  0x25   :  { %128 = shalt.err (%p164_p10)  }
  0x26   :  { %130 = vsyncmov [#allocation2 + $0x1] }
  0x29   :  { %s131_s27 = vpop.sfrf %130 }
  0x2a   :  { %p165_p11 = scmp.ne.s32.totalorder %s131_s27, 0 }
  0x2c   :  { %135 = shalt.err (%p165_p11)  }
  0x2d   :  { %137 = vsyncmov [#allocation2 + $0x2] }
  0x30   :  { %s138_s28 = vpop.sfrf %137 }
  0x31   :  { %p166_p12 = scmp.ne.s32.totalorder %s138_s28, 0 }
  0x33   :  { %142 = shalt.err (%p166_p12)  }
  0x34   :  { %144 = vsyncmov [#allocation2 + $0x3] }
  0x37   :  { %s145_s3 = vpop.sfrf %144 }
  0x38   :  { %p167_p13 = scmp.ne.s32.totalorder %s145_s3, 0 }
  0x3a   :  { %149 = shalt.err (%p167_p13)  }

</bundles_post_ra>
